<compile_context>
chip_gen: v7x
topology: tpu7x:2x2x1
jax: 0.10.0
libtpu: 0.0.40
codegen_flags: <defaults>
</compile_context>

<pallas_src>
import functools

import jax
import jax.numpy as jnp
from jax import lax
from jax.experimental import pallas as pl
from jax.experimental.pallas import tpu as pltpu

_LANE = 128


def _round_up(x: int, m: int) -> int:
    return (x + m - 1) // m * m


def linear1_kernel(x_ref, w1_ref, b1_ref, o1_ref):
    """Grid step k of the V-reduction for o1 = x @ W1.T + b1.

    x_ref  : (B, TK)  column slice k of the input
    w1_ref : (D, TK)  column slice k of W1 (PyTorch layout, no transpose)
    b1_ref : (1, D)   resident
    o1_ref : (B, D)   f32 output block, resident across k — used as accumulator
    """
    k = pl.program_id(0)

    @pl.when(k == 0)
    def _init():
        o1_ref[...] = jnp.zeros_like(o1_ref)

    # Partial sum: x_k (B, TK) · W1_k (D, TK), contracting TK -> (B, D)
    o1_ref[...] += lax.dot_general(
        x_ref[...], w1_ref[...],
        dimension_numbers=(((1,), (1,)), ((), ())),
        preferred_element_type=jnp.float32,
    )

    @pl.when(k == pl.num_programs(0) - 1)
    def _finalize():
        o1_ref[...] += b1_ref[...]


def linear2_logsoftmax_kernel(o1_ref, w2_ref, b2_ref, o_ref):
    """Grid step j over output-V tiles: o2_j = o1 @ W2_j.T + b2_j, then
    numerically-stable log_softmax over dim=0 (batch), written lane-dense.

    o1_ref : (B, D)    resident
    w2_ref : (TN, D)   row slice j of W2 (PyTorch layout, no transpose)
    b2_ref : (1, TN)   slice j of b2
    o_ref  : (B, TN)   output tile j
    """
    o2 = lax.dot_general(
        o1_ref[...], w2_ref[...],
        dimension_numbers=(((1,), (1,)), ((), ())),
        preferred_element_type=jnp.float32,
    ) + b2_ref[...]
    # log_softmax over dim=0 (batch). B is the full, un-padded batch, so the
    # axis-0 reduction is exact; vocab columns are independent so tiling V is
    # safe.
    m = jnp.max(o2, axis=0, keepdims=True)                 # (1, TN)
    shifted = o2 - m
    lse = jnp.log(jnp.sum(jnp.exp(shifted), axis=0, keepdims=True))
    o_ref[...] = (shifted - lse).astype(o_ref.dtype)


@functools.partial(jax.jit, static_argnames=("tile_k", "tile_n"))
def skipgram_forward(x, w1, b1, w2, b2, *, tile_k: int = 512, tile_n: int = 512):
    """x: (B, V); w1: (D, V); b1: (D,); w2: (V, D); b2: (V,). Returns (B, V)."""
    B, V = x.shape
    D = w1.shape[0]

    # Lane-dense vocab tiles (multiples of 128), clamped for small V.
    v128 = _round_up(V, _LANE)
    tk = _round_up(max(_LANE, min(tile_k, v128)), _LANE)
    tn = _round_up(max(_LANE, min(tile_n, v128)), _LANE)
    vk = _round_up(V, tk)   # padded V along the reduction axis
    vn = _round_up(V, tn)   # padded V along the output axis

    xk = jnp.pad(x, ((0, 0), (0, vk - V))) if vk != V else x
    w1k = jnp.pad(w1, ((0, 0), (0, vk - V))) if vk != V else w1
    w2n = jnp.pad(w2, ((0, vn - V), (0, 0))) if vn != V else w2
    b2n = jnp.pad(b2, ((0, vn - V),)) if vn != V else b2

    b1r = b1.reshape(1, D)
    b2r = b2n.reshape(1, vn)

    n_k = vk // tk   # reduction-V tiles (arbitrary)
    n_n = vn // tn   # output-V tiles (parallel)

    # ---- Kernel A: o1 = x @ W1.T + b1 ------------------------------------
    o1 = pl.pallas_call(
        linear1_kernel,
        out_shape=jax.ShapeDtypeStruct((B, D), jnp.float32),
        grid_spec=pltpu.PrefetchScalarGridSpec(
            num_scalar_prefetch=0,
            grid=(n_k,),
            in_specs=[
                pl.BlockSpec((B, tk), lambda k: (0, k)),   # x column tile
                pl.BlockSpec((D, tk), lambda k: (0, k)),   # W1 column tile
                pl.BlockSpec((1, D), lambda k: (0, 0)),    # b1 (resident)
            ],
            out_specs=pl.BlockSpec((B, D), lambda k: (0, 0)),  # acc-in-place
        ),
        compiler_params=pltpu.CompilerParams(
            dimension_semantics=("arbitrary",),
        ),
    )(xk, w1k, b1r)

    # ---- Kernel B: log_softmax(o1 @ W2.T + b2, dim=0) --------------------
    out = pl.pallas_call(
        linear2_logsoftmax_kernel,
        out_shape=jax.ShapeDtypeStruct((B, vn), jnp.float32),
        grid_spec=pltpu.PrefetchScalarGridSpec(
            num_scalar_prefetch=0,
            grid=(n_n,),
            in_specs=[
                pl.BlockSpec((B, D), lambda j: (0, 0)),    # o1 (resident)
                pl.BlockSpec((tn, D), lambda j: (j, 0)),   # W2 row tile
                pl.BlockSpec((1, tn), lambda j: (0, j)),   # b2 tile
            ],
            out_specs=pl.BlockSpec((B, tn), lambda j: (0, j)),
        ),
        compiler_params=pltpu.CompilerParams(
            dimension_semantics=("parallel",),
        ),
    )(o1, w2n, b2r)

    return out[:, :V] if vn != V else out


def skipgram_reference(x, w1, b1, w2, b2):
    hi = jax.lax.Precision.HIGHEST
    o1 = jnp.dot(x, w1.T, precision=hi) + b1
    o2 = jnp.dot(o1, w2.T, precision=hi) + b2
    return jax.nn.log_softmax(o2, axis=0)


if __name__ == "__main__":
    # Small but MXU/lane-friendly shapes consistent with the module's forward.
    B = 8      # batch
    V = 512    # vocab_size
    D = 128    # d_model

    key = jax.random.PRNGKey(0)
    kx, kw1, kb1, kw2, kb2 = jax.random.split(key, 5)

    # Parameter shapes match nn.Linear: weight is (out_features, in_features).
    x = jax.random.normal(kx, (B, V), dtype=jnp.float32)
    w1 = jax.random.normal(kw1, (D, V), dtype=jnp.float32) * 0.1
    b1 = jax.random.normal(kb1, (D,), dtype=jnp.float32) * 0.1
    w2 = jax.random.normal(kw2, (V, D), dtype=jnp.float32) * 0.1
    b2 = jax.random.normal(kb2, (V,), dtype=jnp.float32) * 0.1

    # Use a smaller tile so the small example exercises multi-tile grids
    # (n_k = n_n = 2 for V = 512).
    out = skipgram_forward(x, w1, b1, w2, b2, tile_k=256, tile_n=256)
    jax.block_until_ready(out)

    ref = skipgram_reference(x, w1, b1, w2, b2)
    assert out.shape == (B, V)
    assert jnp.allclose(out, ref, atol=1e-3, rtol=1e-3), (
        f"mismatch vs reference: max abs err {jnp.max(jnp.abs(out - ref))}")

    # Also exercise a non-multiple-of-128 vocab (padding path).
    V2 = 96
    x2 = jax.random.normal(kx, (B, V2), dtype=jnp.float32)
    w1_2 = jax.random.normal(kw1, (D, V2), dtype=jnp.float32) * 0.1
    w2_2 = jax.random.normal(kw2, (V2, D), dtype=jnp.float32) * 0.1
    b2_2 = jax.random.normal(kb2, (V2,), dtype=jnp.float32) * 0.1
    out2 = skipgram_forward(x2, w1_2, b1, w2_2, b2_2)
    jax.block_until_ready(out2)
    ref2 = skipgram_reference(x2, w1_2, b1, w2_2, b2_2)
    assert out2.shape == (B, V2)
    assert jnp.allclose(out2, ref2, atol=1e-3, rtol=1e-3), "padded-V mismatch"

    print("KERNEL_OK")
</pallas_src>

<mosaic_0001>
module attributes {stable_mosaic.version = 11 : i64} {
  func.func @linear2_logsoftmax_kernel(%arg0: i32, %arg1: memref<8x128xf32, #tpu.memory_space<vmem>>, %arg2: memref<256x128xf32, #tpu.memory_space<vmem>>, %arg3: memref<1x256xf32, #tpu.memory_space<vmem>>, %arg4: memref<8x256xf32, #tpu.memory_space<vmem>>) attributes {dimension_semantics = [#tpu.dimension_semantics<parallel>], iteration_bounds = array<i64: 2>, scalar_prefetch = 0 : i64, scratch_operands = 0 : i64, tpu.core_type = #tpu.core_type<tc>, window_params = [{pipeline_mode = #tpu.pipeline_mode<synchronous>, transform_indices = @transform_0, window_bounds = array<i64: 8, 128>}, {transform_indices = @transform_1, window_bounds = array<i64: 256, 128>}, {transform_indices = @transform_2, window_bounds = array<i64: 1, 256>}, {transform_indices = @transform_3, window_bounds = array<i64: 8, 256>}]} {
    %c0 = arith.constant 0 : index
    %c0_0 = arith.constant 0 : index
    %0 = vector.load %arg1[%c0, %c0_0] : memref<8x128xf32, #tpu.memory_space<vmem>>, vector<8x128xf32>
    %c0_1 = arith.constant 0 : index
    %c0_2 = arith.constant 0 : index
    %1 = vector.load %arg2[%c0_1, %c0_2] : memref<256x128xf32, #tpu.memory_space<vmem>>, vector<256x128xf32>
    %cst = arith.constant dense<0.000000e+00> : vector<8x256xf32>
    %2 = tpu.matmul %0, %1, %cst {dimension_numbers = #tpu.dot_dimension_numbers<[1], [1], [0], [0], [0, 0, 1, 0], [], []>} : vector<8x128xf32>, vector<256x128xf32>, vector<8x256xf32> -> vector<8x256xf32>
    %c0_3 = arith.constant 0 : index
    %c0_4 = arith.constant 0 : index
    %3 = vector.load %arg3[%c0_3, %c0_4] : memref<1x256xf32, #tpu.memory_space<vmem>>, vector<1x256xf32>
    %4 = vector.broadcast %3 : vector<1x256xf32> to vector<8x256xf32>
    %5 = arith.addf %2, %4 : vector<8x256xf32>
    %cst_5 = arith.constant dense<0xFF800000> : vector<256xf32>
    %6 = vector.multi_reduction <maximumf>, %5, %cst_5 [0] : vector<8x256xf32> to vector<256xf32>
    %7 = vector.shape_cast %6 : vector<256xf32> to vector<1x256xf32>
    %8 = vector.broadcast %7 : vector<1x256xf32> to vector<8x256xf32>
    %9 = arith.subf %5, %8 : vector<8x256xf32>
    %10 = math.exp %9 : vector<8x256xf32>
    %cst_6 = arith.constant dense<0.000000e+00> : vector<256xf32>
    %11 = vector.multi_reduction <add>, %10, %cst_6 [0] : vector<8x256xf32> to vector<256xf32>
    %12 = vector.shape_cast %11 : vector<256xf32> to vector<1x256xf32>
    %13 = math.log %12 : vector<1x256xf32>
    %14 = vector.broadcast %13 : vector<1x256xf32> to vector<8x256xf32>
    %15 = arith.subf %9, %14 : vector<8x256xf32>
    %c0_7 = arith.constant 0 : index
    %c0_8 = arith.constant 0 : index
    %16 = vector.load %arg4[%c0_7, %c0_8] : memref<8x256xf32, #tpu.memory_space<vmem>>, vector<8x256xf32>
    tpu.vector_store %arg4[%c0_7, %c0_8], %15 {strides = array<i32>} : memref<8x256xf32, #tpu.memory_space<vmem>>, vector<8x256xf32>,
    return
  }
  func.func @transform_0(%arg0: i32) -> (i32, i32) {
    %c0_i32 = arith.constant 0 : i32
    %c0_i32_0 = arith.constant 0 : i32
    %c0_i32_1 = arith.constant 0 : i32
    return %c0_i32, %c0_i32_0 : i32, i32
  }
  func.func @transform_1(%arg0: i32) -> (i32, i32) {
    %c0_i32 = arith.constant 0 : i32
    %c0_i32_0 = arith.constant 0 : i32
    return %arg0, %c0_i32 : i32, i32
  }
  func.func @transform_2(%arg0: i32) -> (i32, i32) {
    %c0_i32 = arith.constant 0 : i32
    %c0_i32_0 = arith.constant 0 : i32
    return %c0_i32, %arg0 : i32, i32
  }
  func.func @transform_3(%arg0: i32) -> (i32, i32) {
    %c0_i32 = arith.constant 0 : i32
    %c0_i32_0 = arith.constant 0 : i32
    return %c0_i32, %arg0 : i32, i32
  }
}

module attributes {stable_mosaic.version = 11 : i64} {
  func.func @linear1_kernel(%arg0: i32, %arg1: memref<8x256xf32, #tpu.memory_space<vmem>>, %arg2: memref<128x256xf32, #tpu.memory_space<vmem>>, %arg3: memref<1x128xf32, #tpu.memory_space<vmem>>, %arg4: memref<8x128xf32, #tpu.memory_space<vmem>>) attributes {dimension_semantics = [#tpu.dimension_semantics<arbitrary>], iteration_bounds = array<i64: 2>, scalar_prefetch = 0 : i64, scratch_operands = 0 : i64, tpu.core_type = #tpu.core_type<tc>, window_params = [{transform_indices = @transform_0, window_bounds = array<i64: 8, 256>}, {transform_indices = @transform_1, window_bounds = array<i64: 128, 256>}, {pipeline_mode = #tpu.pipeline_mode<synchronous>, transform_indices = @transform_2, window_bounds = array<i64: 1, 128>}, {pipeline_mode = #tpu.pipeline_mode<synchronous>, transform_indices = @transform_3, window_bounds = array<i64: 8, 128>}]} {
    %c0_i32 = arith.constant 0 : i32
    %0 = arith.cmpi eq, %arg0, %c0_i32 : i32
    %1 = arith.extui %0 : i1 to i32
    %c0_i32_0 = arith.constant 0 : i32
    %2 = arith.cmpi ne, %1, %c0_i32_0 : i32
    scf.if %2 {
      %cst_9 = arith.constant 0.000000e+00 : f32
      %12 = vector.broadcast %cst_9 : f32 to vector<8x128xf32>
      %c0_10 = arith.constant 0 : index
      %c0_11 = arith.constant 0 : index
      %13 = vector.load %arg4[%c0_10, %c0_11] : memref<8x128xf32, #tpu.memory_space<vmem>>, vector<8x128xf32>
      tpu.vector_store %arg4[%c0_10, %c0_11], %12 {strides = array<i32>} : memref<8x128xf32, #tpu.memory_space<vmem>>, vector<8x128xf32>,
    } else {
    }
    %c0 = arith.constant 0 : index
    %c0_1 = arith.constant 0 : index
    %3 = vector.load %arg4[%c0, %c0_1] : memref<8x128xf32, #tpu.memory_space<vmem>>, vector<8x128xf32>
    %c0_2 = arith.constant 0 : index
    %c0_3 = arith.constant 0 : index
    %4 = vector.load %arg1[%c0_2, %c0_3] : memref<8x256xf32, #tpu.memory_space<vmem>>, vector<8x256xf32>
    %c0_4 = arith.constant 0 : index
    %c0_5 = arith.constant 0 : index
    %5 = vector.load %arg2[%c0_4, %c0_5] : memref<128x256xf32, #tpu.memory_space<vmem>>, vector<128x256xf32>
    %cst = arith.constant dense<0.000000e+00> : vector<8x128xf32>
    %6 = tpu.matmul %4, %5, %cst {dimension_numbers = #tpu.dot_dimension_numbers<[1], [1], [0], [0], [0, 0, 1, 0], [], []>} : vector<8x256xf32>, vector<128x256xf32>, vector<8x128xf32> -> vector<8x128xf32>
    %7 = arith.addf %3, %6 : vector<8x128xf32>
    %c0_6 = arith.constant 0 : index
    %c0_7 = arith.constant 0 : index
    %8 = vector.load %arg4[%c0_6, %c0_7] : memref<8x128xf32, #tpu.memory_space<vmem>>, vector<8x128xf32>
    tpu.vector_store %arg4[%c0_6, %c0_7], %7 {strides = array<i32>} : memref<8x128xf32, #tpu.memory_space<vmem>>, vector<8x128xf32>,
    %c1_i32 = arith.constant 1 : i32
    %9 = arith.cmpi eq, %arg0, %c1_i32 : i32
    %10 = arith.extui %9 : i1 to i32
    %c0_i32_8 = arith.constant 0 : i32
    %11 = arith.cmpi ne, %10, %c0_i32_8 : i32
    scf.if %11 {
      %c0_9 = arith.constant 0 : index
      %c0_10 = arith.constant 0 : index
      %12 = vector.load %arg4[%c0_9, %c0_10] : memref<8x128xf32, #tpu.memory_space<vmem>>, vector<8x128xf32>
      %c0_11 = arith.constant 0 : index
      %c0_12 = arith.constant 0 : index
      %13 = vector.load %arg3[%c0_11, %c0_12] : memref<1x128xf32, #tpu.memory_space<vmem>>, vector<1x128xf32>
      %14 = vector.broadcast %13 : vector<1x128xf32> to vector<8x128xf32>
      %15 = arith.addf %12, %14 : vector<8x128xf32>
      %c0_13 = arith.constant 0 : index
      %c0_14 = arith.constant 0 : index
      %16 = vector.load %arg4[%c0_13, %c0_14] : memref<8x128xf32, #tpu.memory_space<vmem>>, vector<8x128xf32>
      tpu.vector_store %arg4[%c0_13, %c0_14], %15 {strides = array<i32>} : memref<8x128xf32, #tpu.memory_space<vmem>>, vector<8x128xf32>,
    } else {
    }
    return
  }
  func.func @transform_0(%arg0: i32) -> (i32, i32) {
    %c0_i32 = arith.constant 0 : i32
    %c0_i32_0 = arith.constant 0 : i32
    return %c0_i32, %arg0 : i32, i32
  }
  func.func @transform_1(%arg0: i32) -> (i32, i32) {
    %c0_i32 = arith.constant 0 : i32
    %c0_i32_0 = arith.constant 0 : i32
    return %c0_i32, %arg0 : i32, i32
  }
  func.func @transform_2(%arg0: i32) -> (i32, i32) {
    %c0_i32 = arith.constant 0 : i32
    %c0_i32_0 = arith.constant 0 : i32
    %c0_i32_1 = arith.constant 0 : i32
    return %c0_i32, %c0_i32_0 : i32, i32
  }
  func.func @transform_3(%arg0: i32) -> (i32, i32) {
    %c0_i32 = arith.constant 0 : i32
    %c0_i32_0 = arith.constant 0 : i32
    %c0_i32_1 = arith.constant 0 : i32
    return %c0_i32, %c0_i32_0 : i32, i32
  }
}

</mosaic_0001>

<bundles_post_ra>
// kernel: skipgram_forward.3
= control target key start
LH: loop header
LB: loop body
LE: loop exit
PB: predicated region body
PF: predicated region fallthrough
CT: control target
= control target key end

     0   :  { %8 = vsyncpa [#allocation3], 0  ;;  %s784_s0 = inlined_call_operand.vmem [shape: f32[8,128], index: 0, kind: input, shape index: {}]   ;;  %s785_s1 = inlined_call_operand.vmem [shape: f32[512,128], index: 1, kind: input, shape index: {}]   ;;  %s786_s2 = inlined_call_operand.vmem [shape: f32[1,512], index: 2, kind: input, shape index: {}]   ;;  %s787_s3 = inlined_call_operand.hbm [shape: f32[8,512], index: 3, kind: output, shape index: {}]  }
   0x1   :  { %10 = vsyncpa [#allocation3 + $0x1], 0  ;;  %s640_s12 = smov 0   ;;  %s642_s13 = smov 0  }
   0x2   :  { %s644_s14 = smov 0   ;;  %s646_s15 = smov 0  }
   0x3 LB: > { %s661_s16 = sadd.s32 4294967295, %s617_s15   ;;  %s428_s17 = sadd.s32 4294967294, %s617_s15   ;;  %s617_s15 = sphi %s646_s15, %s793_s15   ;;  %s613_s14 = sphi %s644_s14, %s792_s14   ;;  %s609_s13 = sphi %s642_s13, %s791_s13   ;;  %s605_s12 = sphi %s640_s12, %s790_s12  }
   0x4   : > { %s665_s18 = sadd.s32 1, %s617_s15   ;;  %s96_s19 = sadd.s32 1, %s613_s14 }
   0x5   : > { %s93_s20 = ssub.s32 %s617_s15, %s665_s18  ;;  %p106_p0 = scmp.ne.s32.totalorder %s613_s14, %s609_s13 }
   0x6   : > { %p94_p1 = scmp.eq.s32.totalorder %s93_s20, 0  ;;  %p107_p2 = scmp.eq.s32.totalorder %s661_s16, 1 }
   0x7   : > { %p112_p3 = scmp.ne.s32.totalorder %s609_s13, %s605_s12  ;;  %p113_p4 = scmp.eq.s32.totalorder %s428_s17, 1 }
   0x8   : > { %s676_s21 = scalar_select %p94_p1, %s613_s14, %s96_s19  }
   0x9   : > { %p678_p5 = por %p107_p2, %p106_p0  ;;  %p682_p6 = por %p113_p4, %p112_p3 }
   0xa   : > { %p431_p7 = scmp.ge.s32.totalorder %s617_s15, 1  ;;  %p151_p8 = scmp.lt.s32.totalorder %s617_s15, 3 }
   0xc   : > { %p152_p9 = pnand %p431_p7, %p151_p8 }
   0xd   : > { %s433_s24 = sshll.u32 (!%p152_p9), %s661_s16, 5  ;;  %v692_v0 = vld [vmem:[%s784_s0] sm:$0xff] (!%p152_p9)  ;;  %s435_s4 = sshll.u32 (!%p152_p9), %s661_s16, 1  ;;  %v226_v49 = vlaneseq (!%p152_p9) }
   0xe   : > { %155 = sbr.rel (%p152_p9) target bundleno = 374 (0x176), region = 32  ;;  %p180_p10 = scmp.lt.s32.totalorder (!%p152_p9), %s433_s24, 63  ;;  %474 = vmatprep.mubr.f32.mxu0 (!%p152_p9), %v692_v0 }
   0xf   : > { %p186_p11 = scmp.lt.s32.totalorder (!%p152_p9), %s435_s4, 3  ;;  %v227_v50 = vshrl.u32 (!%p152_p9), %v226_v49, 7  ;;  %s176_s8 = sand.u32 (!%p152_p9), 1, %s609_s13  }
  0x10   : > { %s432_s9 = sshll.u32 (!%p152_p9), %s176_s8, 4  ;;  %s441_s10 = sshll.u32 (!%p152_p9), %s661_s16, 8 }
  0x11   : > { %v228_v51 = vsub.s32 (!%p152_p9), 0, %v227_v50  ;;  %v232_v53 = vsub.s32 (!%p152_p9), 1, %v227_v50  ;;  %s178_s11 = scalar_lea.vmem (!%p152_p9), [#allocation2], %s432_s9  ;;  %s346_s25 = scalar_lea.sflag (!%p152_p9), [#allocation3], %s176_s8 }
  0x12   : > { %s360_s17 = sshll.u32 (!%p152_p9), %s178_s11, 4  ;;  %s619_s16 = smov (!%p152_p9), [#allocation2]   ;;  %s744_s17 = int_to_ptr.vmem [resolvable:$true] %s360_s17 }
  0x13   : > { %s555_s26 = scalar_lea.vmem (!%p152_p9), %s744_s17, 256 }
  0x14   : > { %p556_p12 = scmp.ne.s32.totalorder (!%p152_p9), %s744_s17, %s555_s26 }
  0x15   : > { %s795_s24 = smov (!%p180_p10, %s433_s24), 63  ;;  %s797_s4 = smov (!%p186_p11, %s435_s4), 3 }
  0x16   : > { %s434_s27 = sshll.u32 %s795_s24, 3  ;;  %s188_s7 = scalar_lea.vmem %s786_s2, %s797_s4 }
  0x17   : > { %s698_s30 = scalar_lea.vmem %s785_s1, %s434_s27  ;;  %v224_v52 = vld [vmem:[%s188_s7] sm:$0x3]  ;;  %s742_s24 = scalar_lea.hbm %s787_s3, %s441_s10 }
  0x18   : > { %v208_v1 = vld [vmem:[%s698_s30 + $0x80] sm:$0xff]  ;;  %v209_v2 = vld [vmem:[%s698_s30 + $0x88] sm:$0xff]  ;;  %v210_v6 = vld [vmem:[%s698_s30 + $0x90] sm:$0xff]  ;;  %v229_v54 = vrot.slane %v224_v52, %v228_v51  ;;  %v233_v55 = vrot.slane %v224_v52, %v232_v53  ;;  %p557_p13 = pnand %p556_p12, %p678_p5  ;;  %s559_s27 = sshll.u32 %s619_s16, 4  ;;  %s560_s27 = int_to_ptr.vmem [resolvable:$false] %s559_s27 }
  0x19   : > { %v192_v3 = vld [vmem:[%s698_s30] sm:$0xff]  ;;  %v476_v4 = vpack.c.bf16 %v209_v2, %v208_v1  ;;  %v193_v5 = vld [vmem:[%s698_s30 + $0x8] sm:$0xff]  ;;  %v211_v7 = vld [vmem:[%s698_s30 + $0x98] sm:$0xff]  ;;  %s561_s28 = scalar_lea.vmem %s560_s27, 512  ;;  %p562_p1 = scmp.lt.s32.totalorder %s744_s17, %s560_s27 }
  0x1a   : > { %v478_v8 = vpack.c.bf16 %v193_v5, %v192_v3  ;;  %v480_v9 = vpack.c.bf16 %v211_v7, %v210_v6  ;;  %v194_v10 = vld [vmem:[%s698_s30 + $0x10] sm:$0xff]  ;;  %v195_v11 = vld [vmem:[%s698_s30 + $0x18] sm:$0xff]  ;;  %v212_v12 = vld [vmem:[%s698_s30 + $0xa0] sm:$0xff]  ;;  %p558_p0 = pneg %p557_p13  ;;  %p563_p2 = scmp.lt.s32.totalorder %s561_s28, %s555_s26 }
  0x1b   : > { %477 = vmatprep.subr.bf16.mxu0 %v476_v4  ;;  %v213_v13 = vld [vmem:[%s698_s30 + $0xa8] sm:$0xff]  ;;  %v482_v14 = vpack.c.bf16 %v195_v11, %v194_v10  ;;  %v196_v16 = vld [vmem:[%s698_s30 + $0x20] sm:$0xff]  ;;  %v214_v18 = vld [vmem:[%s698_s30 + $0xb0] sm:$0xff] }
  0x1c   : > { %479 = vmatpush3.bf16.xpose.msra.mxu0 %v478_v8  ;;  %v484_v15 = vpack.c.bf16 %v213_v13, %v212_v12  ;;  %v197_v17 = vld [vmem:[%s698_s30 + $0x28] sm:$0xff]  ;;  %v215_v19 = vld [vmem:[%s698_s30 + $0xb8] sm:$0xff]  ;;  %v198_v22 = vld [vmem:[%s698_s30 + $0x30] sm:$0xff]  ;;  %p564_p3 = por %p563_p2, %p562_p1 }
  0x1d   : > { %481 = vmatprep.subr.bf16.mxu0 %v480_v9  ;;  %v486_v20 = vpack.c.bf16 %v197_v17, %v196_v16  ;;  %v488_v21 = vpack.c.bf16 %v215_v19, %v214_v18  ;;  %v199_v23 = vld [vmem:[%s698_s30 + $0x38] sm:$0xff]  ;;  %v216_v24 = vld [vmem:[%s698_s30 + $0xc0] sm:$0xff]  ;;  %v217_v25 = vld [vmem:[%s698_s30 + $0xc8] sm:$0xff] }
  0x1e   : > { %v490_v26 = vpack.c.bf16 %v199_v23, %v198_v22  ;;  %v492_v27 = vpack.c.bf16 %v217_v25, %v216_v24  ;;  %v200_v28 = vld [vmem:[%s698_s30 + $0x40] sm:$0xff]  ;;  %v201_v29 = vld [vmem:[%s698_s30 + $0x48] sm:$0xff]  ;;  %v218_v30 = vld [vmem:[%s698_s30 + $0xd0] sm:$0xff]  ;;  %p565_p4 = pnand %p564_p3, %p558_p0 }
  0x1f   : > { %v219_v31 = vld [vmem:[%s698_s30 + $0xd8] sm:$0xff]  ;;  %v494_v32 = vpack.c.bf16 %v201_v29, %v200_v28  ;;  %v202_v34 = vld [vmem:[%s698_s30 + $0x50] sm:$0xff]  ;;  %v220_v36 = vld [vmem:[%s698_s30 + $0xe0] sm:$0xff] }
  0x20   : > { %v496_v33 = vpack.c.bf16 %v219_v31, %v218_v30  ;;  %v203_v35 = vld [vmem:[%s698_s30 + $0x58] sm:$0xff]  ;;  %v221_v37 = vld [vmem:[%s698_s30 + $0xe8] sm:$0xff]  ;;  %v204_v40 = vld [vmem:[%s698_s30 + $0x60] sm:$0xff] }
  0x21   : > { %v498_v38 = vpack.c.bf16 %v203_v35, %v202_v34  ;;  %v500_v39 = vpack.c.bf16 %v221_v37, %v220_v36  ;;  %v205_v41 = vld [vmem:[%s698_s30 + $0x68] sm:$0xff]  ;;  %v222_v42 = vld [vmem:[%s698_s30 + $0xf0] sm:$0xff]  ;;  %v223_v43 = vld [vmem:[%s698_s30 + $0xf8] sm:$0xff] }
  0x22   : > { %v502_v44 = vpack.c.bf16 %v205_v41, %v204_v40  ;;  %v504_v45 = vpack.c.bf16 %v223_v43, %v222_v42  ;;  %v206_v46 = vld [vmem:[%s698_s30 + $0x70] sm:$0xff]  ;;  %v207_v47 = vld [vmem:[%s698_s30 + $0x78] sm:$0xff] }
  0x23   : > { %v506_v48 = vpack.c.bf16 %v207_v47, %v206_v46 }
  0x24   : > { %483 = vmatpush3.bf16.xpose.msra.mxu0 %v482_v14 }
  0x25   : > { %485 = vmatprep.subr.bf16.mxu0 %v484_v15 }
  0x2c   : > { %487 = vmatpush3.bf16.xpose.msra.mxu0 %v486_v20 }
  0x2d   : > { %489 = vmatprep.subr.bf16.mxu0 %v488_v21 }
  0x34   : > { %491 = vmatpush3.bf16.xpose.msra.mxu0 %v490_v26 }
  0x35   : > { %493 = vmatprep.subr.bf16.mxu0 %v492_v27 }
  0x3c   : > { %495 = vmatpush3.bf16.xpose.msra.mxu0 %v494_v32 }
  0x3d   : > { %497 = vmatprep.subr.bf16.mxu0 %v496_v33 }
  0x44   : > { %499 = vmatpush3.bf16.xpose.msra.mxu0 %v498_v38 }
  0x45   : > { %501 = vmatprep.subr.bf16.mxu0 %v500_v39 }
  0x4c   : > { %503 = vmatpush3.bf16.xpose.msra.mxu0 %v502_v44 }
  0x4d   : > { %505 = vmatprep.subr.bf16.mxu0 %v504_v45 }
  0x54   : > { %507 = vmatpush3.bf16.xpose.msra.mxu0 %v506_v48 }
  0x5b   : > { %475 = vmatmul.mubr.f32.vlgmr.msra.gmra.mrb[0].mxu0 %v692_v0 }
 0x12e   : > { %v302_v56 = vpop.f32.mrb[0].mxu0 }
 0x12f   : > { %v303_v57 = vadd.f32 %v302_v56, %v229_v54  ;;  %v304_v58 = vpop.f32.mrb[1].mxu0 }
 0x130   : > { %v305_v59 = vadd.f32 %v304_v58, %v233_v55 }
 0x131   : > { %v307_v60 = vrot.slane %v303_v57, 4 }
 0x132   : > { %v313_v61 = vrot.slane %v305_v59, 4 }
 0x133   : > { %v308_v62 = vmax.f32 %v303_v57, %v307_v60 }
 0x134   : > { %v314_v63 = vmax.f32 %v305_v59, %v313_v61 }
 0x135   : > { %v309_v0 = vrot.slane %v308_v62, 2 }
 0x136   : > { %v315_v1 = vrot.slane %v314_v63, 2 }
 0x137   : > { %v310_v2 = vmax.f32 %v308_v62, %v309_v0 }
 0x138   : > { %v316_v3 = vmax.f32 %v314_v63, %v315_v1 }
 0x139   : > { %v311_v4 = vrot.slane %v310_v2, 1 }
 0x13a   : > { %v317_v5 = vrot.slane %v316_v3, 1 }
 0x13b   : > { %v312_v6 = vmax.f32 %v310_v2, %v311_v4 }
 0x13c   : > { %v318_v7 = vmax.f32 %v316_v3, %v317_v5 }
 0x13d   : > { %v319_v8 = vsub.f32 %v303_v57, %v312_v6 }
 0x13e   : > { %v320_v9 = vsub.f32 %v305_v59, %v318_v7 }
 0x13f   : > { %v321_v10 = vmul.f32 1.442695, %v319_v8 }
 0x140   : > { %v323_v11 = vmul.f32 1.442695, %v320_v9 }
 0x141   : > { %547 = vpow2.f32 %v321_v10 }
 0x142   : > { %549 = vpow2.f32 %v323_v11 }
 0x14b   : > { %v548_v12 = vpop.eup %547 }
 0x14c   : > { %v550_v13 = vpop.eup %549  ;;  %v325_v14 = vrot.slane %v548_v12, 4 }
 0x14d   : > { %v331_v15 = vrot.slane %v550_v13, 4 }
 0x14e   : > { %v326_v16 = vadd.f32 %v548_v12, %v325_v14 }
 0x14f   : > { %v332_v17 = vadd.f32 %v550_v13, %v331_v15 }
 0x150   : > { %v327_v18 = vrot.slane %v326_v16, 2 }
 0x151   : > { %v333_v19 = vrot.slane %v332_v17, 2 }
 0x152   : > { %v328_v20 = vadd.f32 %v327_v18, %v326_v16 }
 0x153   : > { %v334_v21 = vadd.f32 %v333_v19, %v332_v17 }
 0x154   : > { %v329_v22 = vrot.slane %v328_v20, 1 }
 0x155   : > { %v335_v23 = vrot.slane %v334_v21, 1 }
 0x156   : > { %v330_v24 = vadd.f32 %v329_v22, %v328_v20 }
 0x157   : > { %v336_v25 = vadd.f32 %v335_v23, %v334_v21 }
 0x158   : > { %551 = vlog2.f32 %v330_v24 }
 0x159   : > { %553 = vlog2.f32 %v336_v25 }
 0x162   : > { %v552_v26 = vpop.eup %551 }
 0x163   : > { %v554_v27 = vpop.eup %553  ;;  %v338_v28 = vmul.f32 0.6931472, %v552_v26 }
 0x164   : > { %v340_v29 = vmul.f32 0.6931472, %v554_v27 }
 0x165   : > { %v341_v30 = vsub.f32 %v319_v8, %v338_v28 }
 0x166   : > { %v342_v31 = vsub.f32 %v320_v9, %v340_v29 }
 0x167   : > { %343 = vst [vmem:[%s178_s11] sm:$0xff] %v341_v30 }
 0x168   : > { %344 = vst [vmem:[%s178_s11 + $0x8] sm:$0xff] %v342_v31 }
 0x169   : > { %568 = shalt.err (!%p565_p4)
}
 0x16a   : > { %s569_s29 = scalar_lea.hbm %s742_s24, 256  ;;  %s573_s5 = scalar_lea.hbm %s787_s3, 512 }
 0x16b   : > { %p570_p7 = scmp.ne.s32.totalorder %s742_s24, %s569_s29  ;;  %p574_p10 = scmp.lt.u32.totalorder %s742_s24, %s787_s3 }
 0x16c   : > { %p575_p11 = scmp.lt.u32.totalorder %s573_s5, %s569_s29  ;;  %p577_p13 = scmp.lt.u32.totalorder %s569_s29, %s742_s24 }
 0x16d   : > { %p571_p8 = pnand %p570_p7, %p678_p5 }
 0x16e   : > { %p576_p12 = por %p575_p11, %p574_p10 }
 0x16f   : > { %p572_p9 = pneg %p571_p8 }
 0x170   : > { %p578_p0 = por %p577_p13, %p576_p12 }
 0x172   : > { %p579_p1 = pnand %p578_p0, %p572_p9 }
 0x174   : > { %582 = shalt.err (!%p579_p1)
}
 0x175   : > { %508 = dma.vmem_to_hbm [thread:$0]  (%p678_p5), %s744_s17, 256, %s742_s24, %s346_s25  }
 0x176 PF: > { %p514_p2 = scmp.ge.s32.totalorder %s617_s15, 2  ;;  %s372_s8 = sand.u32 1, %s605_s12  }
 0x177   : > { %s373_s9 = scalar_lea.sflag [#allocation3], %s372_s8 }
 0x178   : > { %p511_p3 = pnand %p514_p2, %p682_p6 }
 0x17a   : > { %600 = dma.done.wait (!%p511_p3), %s373_s9, 256  }
 0x17b   : > { %602 = vsyncadd (!%p511_p3), %s373_s9, 4294967040  ;;  %p13_p4 = scmp.ge.s32.totalorder %s665_s18, 4   ;;  %s790_s12 = smov %s609_s13 }
 0x17c   : > { %s791_s13 = smov %s613_s14  ;;  %s792_s14 = smov %s676_s21 }
 0x17d   : > { %s793_s15 = smov %s665_s18  ;;  %15 = sbr.rel (!%p13_p4) target bundleno = 3 (0x3), region = 70 }
 0x184   :  { %378 = vsyncpa [#allocation3], 1 }
 0x185   :  { %380 = vsyncpa [#allocation3 + $0x1], 1 }

// kernel: skipgram_forward.2
= control target key start
LH: loop header
LB: loop body
LE: loop exit
PB: predicated region body
PF: predicated region fallthrough
CT: control target
= control target key end

     0   :  { %8 = vsyncpa [#allocation3], 0  ;;  %s944_s0 = inlined_call_operand.hbm [shape: f32[8,512], index: 0, kind: input, shape index: {}]   ;;  %s945_s1 = inlined_call_operand.hbm [shape: f32[128,512], index: 1, kind: input, shape index: {}]   ;;  %s946_s2 = inlined_call_operand.hbm [shape: f32[1,128], index: 2, kind: input, shape index: {}]   ;;  %s947_s3 = inlined_call_operand.vmem [shape: f32[8,128], index: 3, kind: output, shape index: {}]  }
   0x1   :  { %10 = vsyncpa [#allocation3 + $0x1], 0 }
   0x2   :  { %11 = vsyncpa [#allocation5], 0 }
   0x3   :  { %13 = vsyncpa [#allocation5 + $0x1], 0  ;;  %s696_s12 = smov 0   ;;  %s698_s13 = smov 0  }
   0x4   :  { %s700_s14 = smov 0   ;;  %s702_s15 = smov 0  }
   0x5 LB: > { %s715_s16 = sadd.s32 4294967295, %s667_s15   ;;  %s718_s17 = sadd.s32 1, %s667_s15   ;;  %s667_s15 = sphi %s702_s15, %s966_s15   ;;  %s663_s14 = sphi %s700_s14, %s965_s14   ;;  %s659_s13 = sphi %s698_s13, %s964_s13   ;;  %s655_s12 = sphi %s696_s12, %s963_s12  }
   0x6   : > { %s23_s18 = ssub.s32 %s667_s15, %s718_s17  ;;  %s26_s19 = sadd.s32 1, %s663_s14 }
   0x7   : > { %p24_p0 = scmp.eq.s32.totalorder %s23_s18, 0  ;;  %p33_p1 = scmp.ne.s32.totalorder %s663_s14, %s659_s13 }
   0x8   : > { %p39_p2 = scmp.ne.s32.totalorder %s659_s13, %s655_s12  ;;  %p948_p3 = scmp.eq.s32.totalorder %s715_s16, 0 }
   0x9   : > { %s728_s20 = scalar_select %p24_p0, %s663_s14, %s26_s19  }
   0xa   : > { %p732_p4 = por %p948_p3, %p39_p2  ;;  %p426_p5 = scmp.ge.s32.totalorder %s667_s15, 1 }
   0xb   : > { %p118_p6 = scmp.lt.s32.totalorder %s667_s15, 3  ;;  %s669_s23 = smov [#allocation6]  }
   0xc   : > { %s951_s21 = scalar_select %p732_p4, 1, 0 }
   0xd   : > { %p739_p8 = pnand %p426_p5, %p118_p6  ;;  %s131_s24 = sshll.u32 %s669_s23, 4  ;;  %s132_s24 = int_to_ptr.vmem [resolvable:$true] %s131_s24 }
   0xe   : > { %p34_p9 = scmp.eq.s32.totalorder %s667_s15, 0  ;;  %s755_s26 = sand.u32 1, %s663_s14  }
   0xf   : > { %s952_s22 = scalar_select %p739_p8, 1, 0 }
  0x10   : > { %p486_p10 = pneg %p739_p8  ;;  %p750_p12 = por %p34_p9, %p33_p1 }
  0x11   : > { %s429_s28 = sshll.u32 %s755_s26, 4  ;;  %s444_s29 = sshll.u32 %s667_s15, 8 }
  0x12   : > { %s953_s25 = scalar_select %p750_p12, 1, 0 }
  0x13   : > { %p759_p13 = pnand %p486_p10, %p948_p3  ;;  %s537_s5 = scalar_lea.hbm %s946_s2, 16 }
  0x14   : > { %p538_p0 = scmp.ne.s32.totalorder %s946_s2, %s537_s5  ;;  %p544_p6 = scmp.lt.u32.totalorder %s537_s5, %s946_s2 }
  0x15   : > { %p539_p1 = pneg %p759_p13 }
  0x17   : > { %p540_p2 = pnand %p539_p1, %p538_p0 }
  0x19   : > { %p541_p5 = pneg %p540_p2 }
  0x1b   : > { %p546_p9 = pnand %p544_p6, %p541_p5 }
  0x1d   : > { %549 = shalt.err (!%p546_p9)
}
  0x1e   : > { %s550_s10 = scalar_lea.vmem %s132_s24, 16  ;;  %s557_s11 = scalar_lea.vmem %s132_s24, 32 }
  0x1f   : > { %p551_p10 = scmp.ne.s32.totalorder %s132_s24, %s550_s10  ;;  %p558_p11 = scmp.lt.s32.totalorder %s132_s24, %s132_s24 }
  0x20   : > { %p559_p4 = scmp.lt.s32.totalorder %s557_s11, %s550_s10 }
  0x21   : > { %p553_p7 = pnand %p551_p10, %p539_p1 }
  0x22   : > { %p560_p8 = por %p559_p4, %p558_p11 }
  0x23   : > { %p554_p3 = pneg %p553_p7 }
  0x25   : > { %p561_p12 = pnand %p560_p8, %p554_p3 }
  0x27   : > { %564 = shalt.err (!%p561_p12)
}
  0x28   : > { %489 = dma.hbm_to_vmem [thread:$0]  (!%p759_p13), %s946_s2, 16, %s132_s24, [#allocation5]  }
  0x29   : > { %s784_s30 = scalar_lea.hbm %s944_s0, %s444_s29  ;;  %s146_s4 = scalar_lea.vmem [#allocation2], %s429_s28 }
  0x2a   : > { %s154_s5 = sshll.u32 %s146_s4, 4  ;;  %p955_p3 = scmp.ne.s32.totalorder %s953_s25, 0  ;;  %s786_s5 = int_to_ptr.vmem [resolvable:$true] %s154_s5 }
  0x2b   : > { %p956_p4 = scmp.lt.s32.totalorder %s667_s15, 2  ;;  %s432_s24 = sshll.u32 %s755_s26, 8 }
  0x2c   : > { %s800_s8 = scalar_lea.hbm %s945_s1, %s444_s29  ;;  %s143_s9 = scalar_lea.sflag [#allocation3], %s755_s26 }
  0x2d   : > { %p792_p7 = pnand %p956_p4, %p955_p3  ;;  %s565_s28 = scalar_lea.hbm %s784_s30, 256 }
  0x2e   : > { %p566_p8 = scmp.ne.s32.totalorder %s784_s30, %s565_s28  ;;  %s570_s11 = scalar_lea.hbm %s944_s0, 512 }
  0x2f   : > { %p567_p11 = pneg %p792_p7  ;;  %p571_p0 = scmp.lt.u32.totalorder %s784_s30, %s944_s0 }
  0x30   : > { %p572_p1 = scmp.lt.u32.totalorder %s570_s11, %s565_s28  ;;  %p574_p5 = scmp.lt.u32.totalorder %s565_s28, %s784_s30 }
  0x31   : > { %p568_p12 = pnand %p567_p11, %p566_p8 }
  0x32   : > { %p573_p2 = por %p572_p1, %p571_p0 }
  0x33   : > { %p569_p13 = pneg %p568_p12 }
  0x34   : > { %p575_p6 = por %p574_p5, %p573_p2 }
  0x36   : > { %p576_p9 = pnand %p575_p6, %p569_p13 }
  0x38   : > { %579 = shalt.err (!%p576_p9)
}
  0x39   : > { %s580_s29 = scalar_lea.vmem %s786_s5, 256  ;;  %s670_s19 = smov [#allocation2]  }
  0x3a   : > { %p581_p10 = scmp.ne.s32.totalorder %s786_s5, %s580_s29  ;;  %s585_s23 = sshll.u32 %s670_s19, 4  ;;  %s586_s23 = int_to_ptr.vmem [resolvable:$false] %s585_s23 }
  0x3b   : > { %s587_s4 = scalar_lea.vmem %s586_s23, 512  ;;  %p588_p8 = scmp.lt.s32.totalorder %s786_s5, %s586_s23 }
  0x3c   : > { %p583_p3 = pnand %p581_p10, %p567_p11  ;;  %p589_p12 = scmp.lt.s32.totalorder %s587_s4, %s580_s29 }
  0x3e   : > { %p584_p4 = pneg %p583_p3  ;;  %p590_p0 = por %p589_p12, %p588_p8 }
  0x40   : > { %p591_p1 = pnand %p590_p0, %p584_p4 }
  0x42   : > { %594 = shalt.err (!%p591_p1)
}
  0x43   : > { %493 = dma.hbm_to_vmem [thread:$0]  (!%p792_p7), %s784_s30, 256, %s786_s5, %s143_s9  }
  0x44   : > { %s165_s6 = scalar_lea.vmem [#allocation4], %s432_s24  ;;  %s161_s28 = sand.u32 1, %s667_s15  }
  0x45   : > { %s172_s7 = sshll.u32 %s165_s6, 4  ;;  %s833_s25 = scalar_lea.sflag [#allocation5], %s161_s28  ;;  %s831_s7 = int_to_ptr.vmem [resolvable:$true] %s172_s7 }
  0x46   : > { %s595_s10 = scalar_lea.hbm %s800_s8, 4096  ;;  %s600_s18 = scalar_lea.hbm %s945_s1, 8192 }
  0x47   : > { %p596_p13 = scmp.ne.s32.totalorder %s800_s8, %s595_s10  ;;  %p601_p6 = scmp.lt.u32.totalorder %s800_s8, %s945_s1 }
  0x48   : > { %p602_p9 = scmp.lt.u32.totalorder %s600_s18, %s595_s10  ;;  %p604_p3 = scmp.lt.u32.totalorder %s595_s10, %s800_s8 }
  0x49   : > { %p598_p2 = pnand %p596_p13, %p567_p11 }
  0x4a   : > { %p603_p10 = por %p602_p9, %p601_p6 }
  0x4b   : > { %p599_p5 = pneg %p598_p2 }
  0x4c   : > { %p605_p4 = por %p604_p3, %p603_p10 }
  0x4e   : > { %p606_p8 = pnand %p605_p4, %p599_p5 }
  0x50   : > { %609 = shalt.err (!%p606_p8)
}
  0x51   : > { %s610_s15 = scalar_lea.vmem %s831_s7, 4096  ;;  %s671_s26 = smov [#allocation4]  }
  0x52   : > { %p611_p12 = scmp.ne.s32.totalorder %s831_s7, %s610_s15  ;;  %s615_s5 = sshll.u32 %s671_s26, 4  ;;  %s616_s5 = int_to_ptr.vmem [resolvable:$false] %s615_s5 }
  0x53   : > { %s617_s24 = scalar_lea.vmem %s616_s5, 8192  ;;  %p618_p13 = scmp.lt.s32.totalorder %s831_s7, %s616_s5 }
  0x54   : > { %p613_p0 = pnand %p611_p12, %p567_p11  ;;  %p619_p2 = scmp.lt.s32.totalorder %s617_s24, %s610_s15 }
  0x56   : > { %p614_p1 = pneg %p613_p0  ;;  %p620_p6 = por %p619_p2, %p618_p13 }
  0x58   : > { %p621_p9 = pnand %p620_p6, %p614_p1 }
  0x5a   : > { %624 = shalt.err (!%p621_p9)
}
  0x5b   : > { %s672_s9 = smov 512   ;;  %s673_s19 = smov 256  }
  0x5c   : > { %s674_s23 = smov 16   ;;  %p958_p11 = scmp.ne.s32.totalorder %s952_s22, 0 }
  0x5d   : > { %496 = dma.hbm_to_vmem [thread:$0]  (!%p792_p7), %s800_s8, 4096, %s831_s7, %s833_s25, %s672_s9, %s673_s19, %s674_s23  }
  0x5e   : > { %184 = sbr.rel (%p958_p11) target bundleno = 409 (0x199), region = 32  ;;  %s186_s4 = sand.u32 (!%p958_p11), 1, %s659_s13  }
  0x5f   : > { %s436_s6 = sshll.u32 (!%p958_p11), %s186_s4, 4  ;;  %s187_s28 = scalar_lea.sflag (!%p958_p11), [#allocation3], %s186_s4 }
  0x60   : > { %s862_s10 = scalar_lea.vmem (!%p958_p11), [#allocation2], %s436_s6  ;;  %p959_p5 = scmp.ne.s32.totalorder (!%p958_p11), %s951_s21, 0 }
  0x65   : > { %642 = dma.done.wait (%p959_p5), %s187_s28, 256  }
  0x66   : > { %644 = vsyncadd (%p959_p5), %s187_s28, 4294967040  ;;  %s195_s11 = sand.u32 1, %s715_s16   ;;  %s437_s27 = sshll.u32 %s186_s4, 8 }
  0x67   : > { %s196_s8 = scalar_lea.sflag [#allocation5], %s195_s11  ;;  %s869_s7 = scalar_lea.vmem [#allocation4], %s437_s27 }
  0x68   : > { %646 = dma.done.wait (%p959_p5), %s196_s8, 4096  }
  0x69   : > { %648 = vsyncadd (%p959_p5), %s196_s8, 4294963200  ;;  %p960_p7 = scmp.eq.s32.totalorder %s715_s16, 0 }
  0x6b   : > { %650 = dma.done.wait (%p960_p7), [#allocation5], 16   ;;  %p961_p10 = pmov %p960_p7 }
  0x6c   : > { %p962_p3 = scmp.ne.s32.totalorder %s715_s16, 0 }
  0x6d   : > { %652 = vsyncadd (%p961_p10), [#allocation5], 4294967280  ;;  %v675_v0 = vmov (!%p962_p3), 0.0  }
  0x6e   : > { %231 = sbr.rel (%p962_p3) target bundleno = 117 (0x75), region = 48  ;;  %232 = vst [vmem:[%s947_s3] sm:$0xff] (!%p962_p3), %v675_v0 }
  0x75 PF: > { %v237_v1 = vld [vmem:[%s869_s7 + $0x8] sm:$0xff]  ;;  %v239_v2 = vld [vmem:[%s869_s7 + $0x18] sm:$0xff]  ;;  %v236_v3 = vld [vmem:[%s869_s7] sm:$0xff]  ;;  %p440_p4 = scmp.ne.s32.totalorder %s715_s16, 1 }
  0x76   : > { %v446_v4 = vpack.c.bf16 %v239_v2, %v237_v1  ;;  %v238_v5 = vld [vmem:[%s869_s7 + $0x10] sm:$0xff]  ;;  %v241_v6 = vld [vmem:[%s869_s7 + $0x28] sm:$0xff]  ;;  %v243_v7 = vld [vmem:[%s869_s7 + $0x38] sm:$0xff] }
  0x77   : > { %v448_v8 = vpack.c.bf16 %v238_v5, %v236_v3  ;;  %v450_v9 = vpack.c.bf16 %v243_v7, %v241_v6  ;;  %v240_v10 = vld [vmem:[%s869_s7 + $0x20] sm:$0xff]  ;;  %v242_v11 = vld [vmem:[%s869_s7 + $0x30] sm:$0xff]  ;;  %v245_v12 = vld [vmem:[%s869_s7 + $0x48] sm:$0xff] }
  0x78   : > { %447 = vmatprep.subr.bf16.mxu0 %v446_v4  ;;  %v247_v13 = vld [vmem:[%s869_s7 + $0x58] sm:$0xff]  ;;  %v452_v14 = vpack.c.bf16 %v242_v11, %v240_v10  ;;  %v244_v17 = vld [vmem:[%s869_s7 + $0x40] sm:$0xff]  ;;  %v246_v18 = vld [vmem:[%s869_s7 + $0x50] sm:$0xff] }
  0x79   : > { %449 = vmatpush1.bf16.xpose.msra.mxu0 %v448_v8  ;;  %v454_v15 = vpack.c.bf16 %v247_v13, %v245_v12  ;;  %v235_v16 = vld [vmem:[%s862_s10 + $0x8] sm:$0xff]  ;;  %v456_v21 = vpack.c.bf16 %v246_v18, %v244_v17  ;;  %v248_v23 = vld [vmem:[%s869_s7 + $0x60] sm:$0xff]  ;;  %v250_v24 = vld [vmem:[%s869_s7 + $0x70] sm:$0xff] }
  0x7a   : > { %451 = vmatprep.subr.bf16.mxu0 %v450_v9  ;;  %332 = vmatprep.mubr.f32.mxu0 %v235_v16  ;;  %v249_v19 = vld [vmem:[%s869_s7 + $0x68] sm:$0xff]  ;;  %v251_v20 = vld [vmem:[%s869_s7 + $0x78] sm:$0xff]  ;;  %v460_v27 = vpack.c.bf16 %v250_v24, %v248_v23  ;;  %v252_v29 = vld [vmem:[%s869_s7 + $0x80] sm:$0xff] }
  0x7b   : > { %v458_v22 = vpack.c.bf16 %v251_v20, %v249_v19  ;;  %v253_v25 = vld [vmem:[%s869_s7 + $0x88] sm:$0xff]  ;;  %v255_v26 = vld [vmem:[%s869_s7 + $0x98] sm:$0xff]  ;;  %v254_v30 = vld [vmem:[%s869_s7 + $0x90] sm:$0xff] }
  0x7c   : > { %v462_v28 = vpack.c.bf16 %v255_v26, %v253_v25  ;;  %v257_v31 = vld [vmem:[%s869_s7 + $0xa8] sm:$0xff]  ;;  %v259_v32 = vld [vmem:[%s869_s7 + $0xb8] sm:$0xff]  ;;  %v464_v33 = vpack.c.bf16 %v254_v30, %v252_v29  ;;  %v256_v35 = vld [vmem:[%s869_s7 + $0xa0] sm:$0xff] }
  0x7d   : > { %v466_v34 = vpack.c.bf16 %v259_v32, %v257_v31  ;;  %v258_v36 = vld [vmem:[%s869_s7 + $0xb0] sm:$0xff]  ;;  %v261_v37 = vld [vmem:[%s869_s7 + $0xc8] sm:$0xff]  ;;  %v263_v38 = vld [vmem:[%s869_s7 + $0xd8] sm:$0xff] }
  0x7e   : > { %v468_v39 = vpack.c.bf16 %v258_v36, %v256_v35  ;;  %v470_v40 = vpack.c.bf16 %v263_v38, %v261_v37  ;;  %v260_v41 = vld [vmem:[%s869_s7 + $0xc0] sm:$0xff]  ;;  %v262_v42 = vld [vmem:[%s869_s7 + $0xd0] sm:$0xff]  ;;  %v265_v43 = vld [vmem:[%s869_s7 + $0xe8] sm:$0xff] }
  0x7f   : > { %v267_v44 = vld [vmem:[%s869_s7 + $0xf8] sm:$0xff]  ;;  %v472_v45 = vpack.c.bf16 %v262_v42, %v260_v41  ;;  %v264_v47 = vld [vmem:[%s869_s7 + $0xe0] sm:$0xff]  ;;  %v266_v48 = vld [vmem:[%s869_s7 + $0xf0] sm:$0xff] }
  0x80   : > { %v474_v46 = vpack.c.bf16 %v267_v44, %v265_v43  ;;  %v476_v49 = vpack.c.bf16 %v266_v48, %v264_v47  ;;  %v234_v50 = vld [vmem:[%s862_s10] sm:$0xff] }
  0x81   : > { %453 = vmatpush1.bf16.xpose.msra.mxu0 %v452_v14  ;;  %v233_v51 = vld [vmem:[%s947_s3] sm:$0xff] }
  0x82   : > { %455 = vmatprep.subr.bf16.mxu0 %v454_v15  ;;  %v441_v56 = vld [vmem:[#allocation6] ss:$0 sm:$0xff] (!%p440_p4) }
  0x89   : > { %457 = vmatpush1.bf16.xpose.msra.mxu0 %v456_v21 }
  0x8a   : > { %459 = vmatprep.subr.bf16.mxu0 %v458_v22 }
  0x91   : > { %461 = vmatpush1.bf16.xpose.msra.mxu0 %v460_v27 }
  0x92   : > { %463 = vmatprep.subr.bf16.mxu0 %v462_v28 }
  0x99   : > { %465 = vmatpush1.bf16.xpose.msra.mxu0 %v464_v33 }
  0x9a   : > { %467 = vmatprep.subr.bf16.mxu0 %v466_v34 }
  0xa1   : > { %469 = vmatpush1.bf16.xpose.msra.mxu0 %v468_v39 }
  0xa2   : > { %471 = vmatprep.subr.bf16.mxu0 %v470_v40 }
  0xa9   : > { %473 = vmatpush1.bf16.xpose.msra.mxu0 %v472_v45 }
  0xaa   : > { %475 = vmatprep.subr.bf16.mxu0 %v474_v46 }
  0xb1   : > { %477 = vmatpush1.bf16.xpose.msra.mxu0 %v476_v49 }
  0xb8   : > { %333 = vmatmul.mubr.f32.vlgmr.msra.gmra.mrb[0].mxu0 %v234_v50 }
 0x188   : > { %343 = sbr.rel (%p440_p4) target bundleno = 409 (0x199), region = 52 }
 0x18b   : > { %v334_v52 = vpop.f32.mrb[0].mxu0 }
 0x18c   : > { %v338_v53 = vadd.f32 %v334_v52, %v233_v51  ;;  %v336_v54 = vpop.f32.mrb[1].mxu0 }
 0x18e   : > { %339 = vst [vmem:[%s947_s3] sm:$0xff] %v338_v53 }
 0x195   : > { %v344_v55 = vld [vmem:[%s947_s3] sm:$0xff] }
 0x196   : > { %v352_v57 = vadd.f32 %v441_v56, %v344_v55 }
 0x198   : > { %353 = vst [vmem:[%s947_s3] sm:$0xff] %v352_v57 }
 0x199 PF: > { %p16_p8 = scmp.ge.s32.totalorder %s718_s17, 4   ;;  %s963_s12 = smov %s659_s13 }
 0x19a   : > { %s964_s13 = smov %s663_s14  ;;  %s965_s14 = smov %s728_s20 }
 0x19b   : > { %s966_s15 = smov %s718_s17  ;;  %18 = sbr.rel (!%p16_p8) target bundleno = 5 (0x5), region = 93 }
 0x1a2   :  { %365 = vsyncpa [#allocation3], 1 }
 0x1a3   :  { %367 = vsyncpa [#allocation3 + $0x1], 1 }
 0x1a4   :  { %368 = vsyncpa [#allocation5], 1 }
 0x1a5   :  { %370 = vsyncpa [#allocation5 + $0x1], 1 }

</bundles_post_ra>
